<compile_context>
chip_gen: v6e
topology: v6e:2x2x1
jax: 0.10.0
libtpu: 0.0.40
codegen_flags: <defaults>
</compile_context>

<pallas_src>
import math

import jax
import jax.numpy as jnp
from jax.experimental import pallas as pl
from jax.experimental.pallas import tpu as pltpu

_HIDDEN = 48
_HIDDEN_PAD = 128     # hidden dim padded to one MXU/vreg lane group
_BN_EPS = 1e-5


def _round_up(x, m):
    return ((x + m - 1) // m) * m


def _spec(shape, index_map, buffers=None):
    """BlockSpec, optionally with an explicit buffer count (falls back cleanly
    if the installed Pallas has no pipeline_mode kwarg)."""
    if buffers is not None:
        try:
            return pl.BlockSpec(shape, index_map, pipeline_mode=pl.Buffered(buffers))
        except (AttributeError, TypeError):
            pass
    return pl.BlockSpec(shape, index_map)


def _plan(b_rows, in_dim, n_out, x_itemsize, max_tk=None):
    """Pick (tile_m, tk, nk, vmem_limit_bytes) from the chip's VMEM capacity."""
    try:
        vmem_cap = int(pltpu.get_tpu_info().vmem_capacity_bytes)
    except Exception:
        vmem_cap = 64 << 20          # conservative default (v7x per-core VMEM)
    budget = int(vmem_cap * 0.70)    # headroom for compiler-internal scratch

    def footprint(tm, tk, nk):
        w1_buf = 1 if nk == 1 else 2
        return (2 * tm * tk * x_itemsize            # x tile (double-buffered)
                + w1_buf * tk * _HIDDEN_PAD * 2     # w1 tile (bf16)
                + _HIDDEN_PAD * 4                   # b1 (f32, resident)
                + _HIDDEN_PAD * n_out * 2           # w2 (bf16, resident)
                + n_out * 4                         # b2 (f32, resident)
                + 2 * tm * n_out * 4                # out tile (f32)
                + tm * _HIDDEN_PAD * 4)             # accumulator scratch

    # Largest useful batch tile: 1024 on 128-MiB parts (v5e/v6e), 512 on v7x.
    cap_m = 1024 if vmem_cap >= (100 << 20) else 512
    tile_m = min(cap_m, _round_up(b_rows, 16))      # 16: bf16 sublane packing

    while True:
        if max_tk is not None:
            tk = min(max_tk, in_dim)
        elif footprint(tile_m, in_dim, 1) <= budget:
            tk = in_dim                              # whole reduction in one K tile
        else:
            per_tk = 2 * tile_m * x_itemsize + 2 * _HIDDEN_PAD * 2
            tk = max(128, (budget - footprint(tile_m, 0, 2)) // per_tk // 128 * 128)
            # Prefer a tk that divides in_dim exactly (no ragged-K masking needed).
            for cand in range(tk, 127, -128):
                if in_dim % cand == 0:
                    tk = cand
                    break
        if tk < in_dim:
            tk = max(128, tk // 128 * 128)           # K blocks must be lane-aligned
        tk = min(tk, in_dim)
        nk = pl.cdiv(in_dim, tk)
        if footprint(tile_m, tk, nk) <= budget or tile_m <= 16:
            break
        tile_m = max(16, tile_m // 2)

    vmem_limit = min(int(vmem_cap * 0.9),
                     max(footprint(tile_m, tk, nk) + (8 << 20), 32 << 20))
    return tile_m, tk, nk, int(vmem_limit)


def _make_kernel(k_rem):
    """k_rem: number of valid columns in the ragged last K tile, or None if tk | in_dim."""

    def kernel(x_ref, w1_ref, b1_ref, w2_ref, b2_ref, out_ref, acc_ref):
        k = pl.program_id(1)
        nk = pl.num_programs(1)

        @pl.when(k == 0)
        def _():
            acc_ref[...] = jnp.zeros_like(acc_ref)

        x = x_ref[...].astype(jnp.bfloat16)     # in-kernel cast; f32 streamed once from HBM
        w1 = w1_ref[...]
        if k_rem is not None:
            # Last K tile overhangs in_dim: its padding is unspecified, so zero the
            # overhang of BOTH operands (0 * 0 keeps the accumulation exact).
            on_edge = k == nk - 1
            x_cols = jax.lax.broadcasted_iota(jnp.int32, x.shape, 1)
            x = jnp.where(jnp.logical_or(~on_edge, x_cols < k_rem), x, 0)
            w_rows = jax.lax.broadcasted_iota(jnp.int32, w1.shape, 0)
            w1 = jnp.where(jnp.logical_or(~on_edge, w_rows < k_rem), w1, 0)

        acc_ref[...] += jnp.dot(x, w1, preferred_element_type=jnp.float32)

        @pl.when(k == nk - 1)
        def _():
            h = jnp.maximum(acc_ref[...] + b1_ref[...], 0.0)     # folded BN + ReLU
            # Dropout(p=0.5) is identity in eval mode.
            out = jnp.dot(h.astype(jnp.bfloat16), w2_ref[...],
                          preferred_element_type=jnp.float32) + b2_ref[...]
            out_ref[...] = out

    return kernel


def prepare_params(params):
    """Fold eval-mode BatchNorm into the first Linear and pre-pack weights for the
    kernel. Call ONCE at model load; reuse the result across forward calls."""
    w1, gamma, beta, mean, var, w2, b2 = params
    in_dim = w1.shape[0]
    num_classes = w2.shape[1]

    inv_std = jax.lax.rsqrt(var + _BN_EPS)       # (1, 48)
    scale = gamma * inv_std
    w1_eff = w1 * scale                          # (in_dim, 48)
    b1_eff = beta - mean * scale                 # (1, 48)

    # Pad hidden 48 -> 128 (lane-dense MXU); K and N stay unpadded.
    # Note: w1_eff in bf16 can lose precision if gamma/sqrt(var+eps) is large
    # (ill-conditioned BN stats); keep f32 here if accuracy regresses.
    w1_p = (jnp.zeros((in_dim, _HIDDEN_PAD), jnp.bfloat16)
            .at[:, :_HIDDEN].set(w1_eff.astype(jnp.bfloat16)))
    b1_p = jnp.zeros((1, _HIDDEN_PAD), jnp.float32).at[:, :_HIDDEN].set(b1_eff)
    w2_p = (jnp.zeros((_HIDDEN_PAD, num_classes), jnp.bfloat16)
            .at[:_HIDDEN, :].set(w2.astype(jnp.bfloat16)))
    b2_p = b2.reshape(1, num_classes).astype(jnp.float32)
    return (w1_p, b1_p, w2_p, b2_p)


def linear_head_forward(x_nchw, prepared, *, max_tk=None):
    """x_nchw: (B, C, H, W). Returns (B, num_classes) float32 logits (eval mode)."""
    w1_p, b1_p, w2_p, b2_p = prepared
    B = x_nchw.shape[0]
    in_dim = w1_p.shape[0]
    n_out = w2_p.shape[1]

    # nn.Flatten() on NCHW: row-major (B, C*H*W); contiguous, no data movement.
    x_flat = x_nchw.reshape(B, -1)
    assert x_flat.shape[1] == in_dim

    tile_m, tk, nk, vmem_limit = _plan(B, in_dim, n_out, x_flat.dtype.itemsize, max_tk)
    k_rem = None if in_dim % tk == 0 else in_dim % tk

    grid = (pl.cdiv(B, tile_m), nk)   # ragged last batch tile handled by masking

    cost = pl.CostEstimate(
        flops=2 * B * in_dim * _HIDDEN_PAD + 2 * B * _HIDDEN_PAD * n_out,
        transcendentals=0,
        bytes_accessed=(x_flat.size * x_flat.dtype.itemsize + w1_p.size * 2
                        + b1_p.size * 4 + w2_p.size * 2 + b2_p.size * 4
                        + B * n_out * 4),
    )

    return pl.pallas_call(
        _make_kernel(k_rem),
        out_shape=jax.ShapeDtypeStruct((B, n_out), jnp.float32),
        grid=grid,
        in_specs=[
            _spec((tile_m, tk), lambda i, k: (i, k)),                       # x streams
            _spec((tk, _HIDDEN_PAD), lambda i, k: (k, 0),
                  buffers=1 if nk == 1 else None),                          # w1
            _spec((1, _HIDDEN_PAD), lambda i, k: (0, 0), buffers=1),        # b1 resident
            _spec((_HIDDEN_PAD, n_out), lambda i, k: (0, 0), buffers=1),    # w2 resident
            _spec((1, n_out), lambda i, k: (0, 0), buffers=1),              # b2 resident
        ],
        out_specs=pl.BlockSpec((tile_m, n_out), lambda i, k: (i, 0)),
        scratch_shapes=[pltpu.VMEM((tile_m, _HIDDEN_PAD), jnp.float32)],
        compiler_params=pltpu.CompilerParams(
            dimension_semantics=("parallel", "arbitrary"),
            vmem_limit_bytes=vmem_limit,
        ),
        cost_estimate=cost,
    )(x_flat, w1_p, b1_p, w2_p, b2_p)


def init_params(key, in_dim, num_classes, hidden=_HIDDEN):
    """Deterministic PyTorch-style init (kaiming-uniform for Linear layers)."""
    k1, k2, k3 = jax.random.split(key, 3)

    # nn.Linear(in_dim, 48, bias=False): weight (48, in_dim), U(-1/sqrt(in_dim), 1/sqrt(in_dim))
    bound1 = 1.0 / math.sqrt(in_dim)
    w1_t = jax.random.uniform(k1, (hidden, in_dim), jnp.float32, -bound1, bound1)
    w1 = w1_t.T  # stored as (in_dim, 48) for the kernel

    # BatchNorm1d(48) defaults
    gamma = jnp.ones((1, hidden), jnp.float32)
    beta = jnp.zeros((1, hidden), jnp.float32)
    running_mean = jnp.zeros((1, hidden), jnp.float32)
    running_var = jnp.ones((1, hidden), jnp.float32)

    # nn.Linear(48, num_classes): weight (num_classes, 48), bias (num_classes,)
    bound2 = 1.0 / math.sqrt(hidden)
    w2_t = jax.random.uniform(k2, (num_classes, hidden), jnp.float32, -bound2, bound2)
    w2 = w2_t.T  # (48, num_classes)
    b2 = jax.random.uniform(k3, (1, num_classes), jnp.float32, -bound2, bound2)

    return (w1, gamma, beta, running_mean, running_var, w2, b2)


def _reference(x_nchw, params):
    """Pure-JAX f32 reference of the eval-mode forward pass."""
    w1, gamma, beta, mean, var, w2, b2 = params
    x = x_nchw.reshape(x_nchw.shape[0], -1)
    h = x @ w1
    h = (h - mean) * jax.lax.rsqrt(var + _BN_EPS) * gamma + beta
    h = jnp.maximum(h, 0.0)
    return h @ w2 + b2


if __name__ == "__main__":
    key = jax.random.PRNGKey(0)
    k_x, k_p = jax.random.split(key)

    # Small NCHW input: B=2, C=4, H=W=16  ->  in_dim = 4*16*16 = 1024
    B, C, H, W = 2, 4, 16, 16
    in_dim = C * H * W
    num_classes = 10

    x = jax.random.normal(k_x, (B, C, H, W), jnp.float32)
    params = init_params(k_p, in_dim, num_classes)
    prepared = prepare_params(params)          # once, outside the hot path

    fwd = jax.jit(linear_head_forward, static_argnames=("max_tk",))

    out = jax.block_until_ready(fwd(x, prepared))
    ref = _reference(x, params)
    assert out.shape == (B, num_classes)
    # bf16 MXU operands (f32 accumulation) -> relaxed tolerance vs f32 reference.
    assert jnp.allclose(out, ref, atol=3e-2, rtol=3e-2), "mismatch vs reference"

    # Also exercise the K-tiled path with a ragged last K tile (1024 % 384 = 256).
    out_kt = jax.block_until_ready(fwd(x, prepared, max_tk=384))
    assert jnp.allclose(out_kt, ref, atol=3e-2, rtol=3e-2), "mismatch (K-tiled path)"

    print("KERNEL_OK")
</pallas_src>

<mosaic_0001>
module attributes {stable_mosaic.version = 11 : i64} {
  func.func @kernel(%arg0: i32, %arg1: i32, %arg2: memref<16x1024xf32, #tpu.memory_space<vmem>>, %arg3: memref<1024x128xbf16, #tpu.memory_space<vmem>>, %arg4: memref<1x128xf32, #tpu.memory_space<vmem>>, %arg5: memref<128x10xbf16, #tpu.memory_space<vmem>>, %arg6: memref<1x10xf32, #tpu.memory_space<vmem>>, %arg7: memref<16x10xf32, #tpu.memory_space<vmem>>, %arg8: memref<16x128xf32, #tpu.memory_space<vmem>>) attributes {dimension_semantics = [#tpu.dimension_semantics<parallel>, #tpu.dimension_semantics<arbitrary>], iteration_bounds = array<i64: 1, 1>, scalar_prefetch = 0 : i64, scratch_operands = 1 : i64, tpu.core_type = #tpu.core_type<tc>, window_params = [{transform_indices = @transform_0, window_bounds = array<i64: 16, 1024>}, {pipeline_mode = #tpu.pipeline_mode<synchronous>, transform_indices = @transform_1, window_bounds = array<i64: 1024, 128>}, {pipeline_mode = #tpu.pipeline_mode<synchronous>, transform_indices = @transform_2, window_bounds = array<i64: 1, 128>}, {pipeline_mode = #tpu.pipeline_mode<synchronous>, transform_indices = @transform_3, window_bounds = array<i64: 128, 10>}, {pipeline_mode = #tpu.pipeline_mode<synchronous>, transform_indices = @transform_4, window_bounds = array<i64: 1, 10>}, {transform_indices = @transform_5, window_bounds = array<i64: 16, 10>}]} {
    %c0_i32 = arith.constant 0 : i32
    %0 = arith.cmpi eq, %arg1, %c0_i32 : i32
    %1 = arith.extui %0 : i1 to i32
    %c0_i32_0 = arith.constant 0 : i32
    %2 = arith.cmpi ne, %1, %c0_i32_0 : i32
    scf.if %2 {
      %cst_10 = arith.constant 0.000000e+00 : f32
      %13 = vector.broadcast %cst_10 : f32 to vector<16x128xf32>
      %c0_11 = arith.constant 0 : index
      %c0_12 = arith.constant 0 : index
      %14 = vector.load %arg8[%c0_11, %c0_12] : memref<16x128xf32, #tpu.memory_space<vmem>>, vector<16x128xf32>
      tpu.vector_store %arg8[%c0_11, %c0_12], %13 {strides = array<i32>} : memref<16x128xf32, #tpu.memory_space<vmem>>, vector<16x128xf32>,
    } else {
    }
    %c0 = arith.constant 0 : index
    %c0_1 = arith.constant 0 : index
    %3 = vector.load %arg2[%c0, %c0_1] : memref<16x1024xf32, #tpu.memory_space<vmem>>, vector<16x1024xf32>
    %4 = arith.truncf %3 : vector<16x1024xf32> to vector<16x1024xbf16>
    %c0_2 = arith.constant 0 : index
    %c0_3 = arith.constant 0 : index
    %5 = vector.load %arg3[%c0_2, %c0_3] : memref<1024x128xbf16, #tpu.memory_space<vmem>>, vector<1024x128xbf16>
    %c0_4 = arith.constant 0 : index
    %c0_5 = arith.constant 0 : index
    %6 = vector.load %arg8[%c0_4, %c0_5] : memref<16x128xf32, #tpu.memory_space<vmem>>, vector<16x128xf32>
    %cst = arith.constant dense<0.000000e+00> : vector<16x128xf32>
    %7 = tpu.matmul %4, %5, %cst {dimension_numbers = #tpu.dot_dimension_numbers<[1], [0], [0], [1], [0, 0, 1, 1], [], []>} : vector<16x1024xbf16>, vector<1024x128xbf16>, vector<16x128xf32> -> vector<16x128xf32>
    %8 = arith.addf %6, %7 : vector<16x128xf32>
    %c0_6 = arith.constant 0 : index
    %c0_7 = arith.constant 0 : index
    %9 = vector.load %arg8[%c0_6, %c0_7] : memref<16x128xf32, #tpu.memory_space<vmem>>, vector<16x128xf32>
    tpu.vector_store %arg8[%c0_6, %c0_7], %8 {strides = array<i32>} : memref<16x128xf32, #tpu.memory_space<vmem>>, vector<16x128xf32>,
    %c0_i32_8 = arith.constant 0 : i32
    %10 = arith.cmpi eq, %arg1, %c0_i32_8 : i32
    %11 = arith.extui %10 : i1 to i32
    %c0_i32_9 = arith.constant 0 : i32
    %12 = arith.cmpi ne, %11, %c0_i32_9 : i32
    scf.if %12 {
      %c0_10 = arith.constant 0 : index
      %c0_11 = arith.constant 0 : index
      %13 = vector.load %arg8[%c0_10, %c0_11] : memref<16x128xf32, #tpu.memory_space<vmem>>, vector<16x128xf32>
      %c0_12 = arith.constant 0 : index
      %c0_13 = arith.constant 0 : index
      %14 = vector.load %arg4[%c0_12, %c0_13] : memref<1x128xf32, #tpu.memory_space<vmem>>, vector<1x128xf32>
      %15 = vector.broadcast %14 : vector<1x128xf32> to vector<16x128xf32>
      %16 = arith.addf %13, %15 : vector<16x128xf32>
      %cst_14 = arith.constant 0.000000e+00 : f32
      %17 = vector.broadcast %cst_14 : f32 to vector<16x128xf32>
      %18 = arith.maximumf %16, %17 : vector<16x128xf32>
      %19 = arith.truncf %18 : vector<16x128xf32> to vector<16x128xbf16>
      %c0_15 = arith.constant 0 : index
      %c0_16 = arith.constant 0 : index
      %20 = vector.load %arg5[%c0_15, %c0_16] : memref<128x10xbf16, #tpu.memory_space<vmem>>, vector<128x10xbf16>
      %cst_17 = arith.constant dense<0.000000e+00> : vector<16x10xf32>
      %21 = tpu.matmul %19, %20, %cst_17 {dimension_numbers = #tpu.dot_dimension_numbers<[1], [0], [0], [1], [0, 0, 1, 1], [], []>} : vector<16x128xbf16>, vector<128x10xbf16>, vector<16x10xf32> -> vector<16x10xf32>
      %c0_18 = arith.constant 0 : index
      %c0_19 = arith.constant 0 : index
      %22 = vector.load %arg6[%c0_18, %c0_19] : memref<1x10xf32, #tpu.memory_space<vmem>>, vector<1x10xf32>
      %23 = vector.broadcast %22 : vector<1x10xf32> to vector<16x10xf32>
      %24 = arith.addf %21, %23 : vector<16x10xf32>
      %c0_20 = arith.constant 0 : index
      %c0_21 = arith.constant 0 : index
      %25 = vector.load %arg7[%c0_20, %c0_21] : memref<16x10xf32, #tpu.memory_space<vmem>>, vector<16x10xf32>
      tpu.vector_store %arg7[%c0_20, %c0_21], %24 {strides = array<i32>} : memref<16x10xf32, #tpu.memory_space<vmem>>, vector<16x10xf32>,
    } else {
    }
    return
  }
  func.func @transform_0(%arg0: i32, %arg1: i32) -> (i32, i32) {
    %c0_i32 = arith.constant 0 : i32
    return %arg0, %arg1 : i32, i32
  }
  func.func @transform_1(%arg0: i32, %arg1: i32) -> (i32, i32) {
    %c0_i32 = arith.constant 0 : i32
    %c0_i32_0 = arith.constant 0 : i32
    return %arg1, %c0_i32 : i32, i32
  }
  func.func @transform_2(%arg0: i32, %arg1: i32) -> (i32, i32) {
    %c0_i32 = arith.constant 0 : i32
    %c0_i32_0 = arith.constant 0 : i32
    %c0_i32_1 = arith.constant 0 : i32
    return %c0_i32, %c0_i32_0 : i32, i32
  }
  func.func @transform_3(%arg0: i32, %arg1: i32) -> (i32, i32) {
    %c0_i32 = arith.constant 0 : i32
    %c0_i32_0 = arith.constant 0 : i32
    %c0_i32_1 = arith.constant 0 : i32
    return %c0_i32, %c0_i32_0 : i32, i32
  }
  func.func @transform_4(%arg0: i32, %arg1: i32) -> (i32, i32) {
    %c0_i32 = arith.constant 0 : i32
    %c0_i32_0 = arith.constant 0 : i32
    %c0_i32_1 = arith.constant 0 : i32
    return %c0_i32, %c0_i32_0 : i32, i32
  }
  func.func @transform_5(%arg0: i32, %arg1: i32) -> (i32, i32) {
    %c0_i32 = arith.constant 0 : i32
    %c0_i32_0 = arith.constant 0 : i32
    return %arg0, %c0_i32 : i32, i32
  }
}

</mosaic_0001>

<bundles_post_ra>
// kernel: linear_head_forward.1
= control target key start
LH: loop header
LB: loop body
LE: loop exit
PB: predicated region body
PF: predicated region fallthrough
CT: control target
= control target key end

     0   :  { %10 = vsyncpa [#allocation4], 0  ;;  %s1554_s0 = inlined_call_operand.vmem [shape: f32[2,1024], index: 0, kind: input, shape index: {}]   ;;  %s1555_s1 = inlined_call_operand.hbm [shape: bf16[1024,128], index: 1, kind: input, shape index: {}]   ;;  %s1556_s2 = inlined_call_operand.vmem [shape: f32[1,128], index: 2, kind: input, shape index: {}]   ;;  %s1557_s3 = inlined_call_operand.vmem [shape: bf16[128,10], index: 3, kind: input, shape index: {}]   ;;  %s1558_s4 = inlined_call_operand.vmem [shape: f32[1,10], index: 4, kind: input, shape index: {}]   ;;  %s1559_s5 = inlined_call_operand.hbm [shape: f32[2,10], index: 5, kind: output, shape index: {}]  }
   0x1   :  { %11 = vsyncpa [#allocation5], 0  ;;  %s1413_s18 = smov [#allocation3]  }
   0x2   :  { %s19_s19 = sshll.u32 %s1413_s18, 4  ;;  %s20_s19 = int_to_ptr.vmem [resolvable:$true] %s19_s19 }
   0x3   :  { %s1377_s20 = scalar_lea.vmem %s20_s19, 8192  ;;  %p1382_p1 = scmp.lt.s32.totalorder %s20_s19, %s20_s19 }
   0x4   :  { %p1378_p0 = scmp.ne.s32.totalorder %s20_s19, %s1377_s20  ;;  %p1383_p2 = scmp.lt.s32.totalorder %s1377_s20, %s1377_s20 }
   0x6   :  { %p1384_p3 = por %p1383_p2, %p1382_p1 }
   0x8   :  { %p1385_p4 = pnand %p1384_p3, %p1378_p0 }
   0xa   :  { %1388 = shalt.err (!%p1385_p4)
}
   0xb   :  { %s1414_s21 = smov 64   ;;  %s1415_s22 = smov 4  }
   0xc   :  { %25 = dma.hbm_to_vmem [thread:$0]  %s1555_s1, 8192, %s20_s19, [#allocation4], %s1414_s21, %s1414_s21, %s1415_s22  }
   0xd   :  { %1409 = dma.done.wait [#allocation4], 8192  }
   0xe   :  { %1410 = vsyncadd [#allocation4], 4294959104  ;;  %v1273_v0 = vld [vmem:[#allocation3 + $0x78] sm:$0xff]   ;;  %v1277_v4 = vld [vmem:[#allocation3 + $0x70] sm:$0xff]   ;;  %v1416_v25 = vmov 1983009808   ;;  %v81_v27 = vlaneseq }
   0xf   :  { %v1274_v1 = vld [vmem:[#allocation3 + $0xf8] sm:$0xff]   ;;  %1147 = vmatprep.subr.bf16.mxu0 %v1273_v0  ;;  %v1278_v5 = vld [vmem:[#allocation3 + $0xf0] sm:$0xff]   ;;  %v1281_v8 = vld [vmem:[#allocation3 + $0x68] sm:$0xff]   ;;  %v79_v26 = vunpack.c.l.s4 %v1416_v25  ;;  %vm1418_vm0 = vmmov 0   ;;  %vm1053_vm1 = vcmask 80896  }
  0x10   :  { %v1275_v2 = vld [vmem:[#allocation3 + $0x38] sm:$0xff]   ;;  %1169 = vmatprep.subr.bf16.mxu1 %v1274_v1  ;;  %v1279_v6 = vld [vmem:[#allocation3 + $0x30] sm:$0xff]   ;;  %v1282_v9 = vld [vmem:[#allocation3 + $0xe8] sm:$0xff]   ;;  %v82_v33 = vshrl.u32 %v81_v27, 7 }
  0x11   :  { %v1276_v3 = vld [vmem:[#allocation3 + $0xb8] sm:$0xff]   ;;  %1148 = vmatpush3.bf16.msra.mxu0 %v1275_v2  ;;  %v1280_v7 = vld [vmem:[#allocation3 + $0xb0] sm:$0xff]   ;;  %v1283_v10 = vld [vmem:[#allocation3 + $0x28] sm:$0xff]   ;;  %v80_v32 = vunpack.c.0.s8 %v79_v26 }
  0x12   :  { %1170 = vmatpush3.bf16.msra.mxu1 %v1276_v3  ;;  %1149 = vmatprep.subr.bf16.mxu0 %v1277_v4  ;;  %v1284_v11 = vld [vmem:[#allocation3 + $0xa8] sm:$0xff]   ;;  %v1285_v12 = vld [vmem:[#allocation3 + $0x60] sm:$0xff]   ;;  %v1289_v16 = vld [vmem:[#allocation3 + $0x58] sm:$0xff]  }
  0x13   :  { %1171 = vmatprep.subr.bf16.mxu1 %v1278_v5  ;;  %v1286_v13 = vld [vmem:[#allocation3 + $0xe0] sm:$0xff]   ;;  %v1290_v17 = vld [vmem:[#allocation3 + $0xd8] sm:$0xff]   ;;  %v1293_v20 = vld [vmem:[#allocation3 + $0x50] sm:$0xff]   ;;  %v1455_v37 = vsub.s32 %v80_v32, %v82_v33 }
  0x14   :  { %v1287_v14 = vld [vmem:[#allocation3 + $0x20] sm:$0xff]   ;;  %v1291_v18 = vld [vmem:[#allocation3 + $0x18] sm:$0xff]   ;;  %v1294_v21 = vld [vmem:[#allocation3 + $0xd0] sm:$0xff]  }
  0x15   :  { %1150 = vmatpush3.bf16.msra.mxu0 %v1279_v6  ;;  %v1288_v15 = vld [vmem:[#allocation3 + $0xa0] sm:$0xff]   ;;  %v1292_v19 = vld [vmem:[#allocation3 + $0x98] sm:$0xff]   ;;  %v1295_v22 = vld [vmem:[#allocation3 + $0x10] sm:$0xff]  }
  0x16   :  { %1172 = vmatpush3.bf16.msra.mxu1 %v1280_v7  ;;  %1151 = vmatprep.subr.bf16.mxu0 %v1281_v8  ;;  %v1296_v23 = vld [vmem:[#allocation3 + $0x90] sm:$0xff]   ;;  %v1297_v24 = vld [vmem:[#allocation3 + $0x48] sm:$0xff]   ;;  %v1301_v31 = vld [vmem:[#allocation3 + $0x40] sm:$0xff]  }
  0x17   :  { %1173 = vmatprep.subr.bf16.mxu1 %v1282_v9  ;;  %v1298_v28 = vld [vmem:[#allocation3 + $0xc8] sm:$0xff]   ;;  %v1302_v34 = vld [vmem:[#allocation3 + $0xc0] sm:$0xff]   ;;  %v1317_v53 = vld [vmem:[#allocation3 + $0x178] sm:$0xff]  }
  0x18   :  { %v1299_v29 = vld [vmem:[#allocation3 + $0x8] sm:$0xff]   ;;  %v1303_v35 = vld [vmem:[#allocation3] sm:$0xff]   ;;  %v1318_v58 = vld [vmem:[#allocation3 + $0x1f8] sm:$0xff]  }
  0x19   :  { %1152 = vmatpush3.bf16.msra.mxu0 %v1283_v10  ;;  %v1300_v30 = vld [vmem:[#allocation3 + $0x88] sm:$0xff]   ;;  %v1304_v36 = vld [vmem:[#allocation3 + $0x80] sm:$0xff]   ;;  %v1319_v62 = vld [vmem:[#allocation3 + $0x138] sm:$0xff]  }
  0x1a   :  { %1174 = vmatpush3.bf16.msra.mxu1 %v1284_v11  ;;  %1153 = vmatprep.subr.bf16.mxu0 %v1285_v12  ;;  %v1305_v38 = vld [vmem:[%s1554_s0] ss:$16 sps:$4 sm:$0xff]   ;;  %v1313_v43 = vld [vmem:[%s1554_s0 + $0x4] ss:$16 sps:$4 sm:$0xff]   ;;  %v1320_v2 = vld [vmem:[#allocation3 + $0x1b8] sm:$0xff]  }
  0x1b   :  { %1175 = vmatprep.subr.bf16.mxu1 %v1286_v13  ;;  %v1307_v39 = vld [vmem:[%s1554_s0 + $0x20] ss:$16 sps:$4 sm:$0xff]   ;;  %v84_v42 = vrot.slane %v1305_v38, %v1455_v37  ;;  %v1314_v44 = vld [vmem:[%s1554_s0 + $0x24] ss:$16 sps:$4 sm:$0xff]   ;;  %v91_v50 = vrot.slane %v1313_v43, %v1455_v37  ;;  %v1325_v10 = vld [vmem:[#allocation3 + $0x168] sm:$0xff]  }
  0x1c   :  { %v1309_v40 = vld [vmem:[%s1554_s0 + $0x40] ss:$16 sps:$4 sm:$0xff]   ;;  %v1315_v45 = vld [vmem:[%s1554_s0 + $0x44] ss:$16 sps:$4 sm:$0xff]   ;;  %v98_v46 = vrot.slane %v1307_v39, %v1455_v37  ;;  %v105_v51 = vrot.slane %v1314_v44, %v1455_v37  ;;  %v1326_v11 = vld [vmem:[#allocation3 + $0x1e8] sm:$0xff]  }
  0x1d   :  { %1154 = vmatpush3.bf16.msra.mxu0 %v1287_v14  ;;  %v1311_v41 = vld [vmem:[%s1554_s0 + $0x60] ss:$16 sps:$4 sm:$0xff]   ;;  %v156_v47 = vrot.slane %v1309_v40, %v1455_v37  ;;  %v1316_v49 = vld [vmem:[%s1554_s0 + $0x64] ss:$16 sps:$4 sm:$0xff]   ;;  %v163_v52 = vrot.slane %v1315_v45, %v1455_v37  ;;  %v1327_v12 = vld [vmem:[#allocation3 + $0x128] sm:$0xff]  }
  0x1e   :  { %1176 = vmatpush3.bf16.msra.mxu1 %v1288_v15  ;;  %1155 = vmatprep.subr.bf16.mxu0 %v1289_v16  ;;  %v170_v48 = vrot.slane %v1311_v41, %v1455_v37  ;;  %v107_v54 = vcombine.high %v84_v42, %v98_v46  ;;  %v177_v56 = vrot.slane %v1316_v49, %v1455_v37  ;;  %v1321_v4 = vld [vmem:[#allocation3 + $0x170] sm:$0xff]   ;;  %v1328_v13 = vld [vmem:[#allocation3 + $0x1a8] sm:$0xff]   ;;  %v1329_v14 = vld [vmem:[#allocation3 + $0x160] sm:$0xff]  }
  0x1f   :  { %1177 = vmatprep.subr.bf16.mxu1 %v1290_v17  ;;  %v106_v57 = vcombine.low %v84_v42, %v98_v46  ;;  %v109_v59 = vcombine.high %v91_v50, %v105_v51  ;;  %v108_v61 = vcombine.low %v91_v50, %v105_v51  ;;  %v1322_v7 = vld [vmem:[#allocation3 + $0x1f0] sm:$0xff]   ;;  %v1330_v15 = vld [vmem:[#allocation3 + $0x1e0] sm:$0xff]   ;;  %v1341_v26 = vld [vmem:[#allocation3 + $0x148] sm:$0xff]  }
  0x20   :  { %v179_v55 = vcombine.high %v156_v47, %v170_v48  ;;  %v178_v60 = vcombine.low %v156_v47, %v170_v48  ;;  %v181_v0 = vcombine.high %v163_v52, %v177_v56  ;;  %v180_v1 = vcombine.low %v163_v52, %v177_v56  ;;  %v1323_v8 = vld [vmem:[#allocation3 + $0x130] sm:$0xff]   ;;  %v1331_v16 = vld [vmem:[#allocation3 + $0x120] sm:$0xff]   ;;  %v1342_v27 = vld [vmem:[#allocation3 + $0x1c8] sm:$0xff]  }
  0x21   :  { %1156 = vmatpush3.bf16.msra.mxu0 %v1291_v18  ;;  %v1324_v9 = vld [vmem:[#allocation3 + $0x1b0] sm:$0xff]   ;;  %v1332_v17 = vld [vmem:[#allocation3 + $0x1a0] sm:$0xff]   ;;  %v1333_v18 = vld [vmem:[#allocation3 + $0x158] sm:$0xff]  }
  0x22   :  { %1178 = vmatpush3.bf16.msra.mxu1 %v1292_v19  ;;  %1157 = vmatprep.subr.bf16.mxu0 %v1293_v20  ;;  %v235_v63 = vpack.c.bf16 %v179_v55, %v107_v54  ;;  %v234_v3 = vpack.c.bf16 %v178_v60, %v106_v57  ;;  %v237_v5 = vpack.c.bf16 %v181_v0, %v109_v59  ;;  %v1334_v19 = vld [vmem:[#allocation3 + $0x1d8] sm:$0xff]   ;;  %v1340_v25 = vld [vmem:[#allocation3 + $0x190] sm:$0xff]   ;;  %v1347_v32 = vld [vmem:[#allocation3 + $0x100] sm:$0xff]  }
  0x23   :  { %1179 = vmatprep.subr.bf16.mxu1 %v1294_v21  ;;  %v236_v6 = vpack.c.bf16 %v180_v1, %v108_v61  ;;  %v1335_v20 = vld [vmem:[#allocation3 + $0x118] sm:$0xff]   ;;  %v1348_v33 = vld [vmem:[#allocation3 + $0x180] sm:$0xff]   ;;  %v1362_v0 = vld [vmem:[%s1557_s3 + $0x30] sm:$0xff]  }
  0x24   :  { %788 = vmatprep.mubr.bf16.mxu0 %v235_v63  ;;  %829 = vmatprep.mubr.bf16.mxu1 %v237_v5  ;;  %v1336_v21 = vld [vmem:[#allocation3 + $0x198] sm:$0xff]   ;;  %v1363_v1 = vld [vmem:[%s1557_s3 + $0x28] sm:$0xff]  }
  0x25   :  { %1158 = vmatpush3.bf16.msra.mxu0 %v1295_v22  ;;  %v1337_v22 = vld [vmem:[#allocation3 + $0x150] sm:$0xff]   ;;  %v1355_v38 = vld [vmem:[%s1554_s0 + $0x68] ss:$16 sps:$4 sm:$0xff]   ;;  %v1357_v39 = vld [vmem:[%s1554_s0 + $0xc] ss:$16 sps:$4 sm:$0xff]  }
  0x26   :  { %1180 = vmatpush3.bf16.msra.mxu1 %v1296_v23  ;;  %1159 = vmatprep.subr.bf16.mxu0 %v1297_v24  ;;  %v1338_v23 = vld [vmem:[#allocation3 + $0x1d0] sm:$0xff]   ;;  %v1358_v40 = vld [vmem:[%s1554_s0 + $0x2c] ss:$16 sps:$4 sm:$0xff]   ;;  %v206_v46 = vrot.slane %v1355_v38, %v1455_v37  ;;  %v127_v47 = vrot.slane %v1357_v39, %v1455_v37 }
  0x27   :  { %1181 = vmatprep.subr.bf16.mxu1 %v1298_v28  ;;  %v1339_v24 = vld [vmem:[#allocation3 + $0x110] sm:$0xff]   ;;  %v1343_v28 = vld [vmem:[#allocation3 + $0x108] sm:$0xff]   ;;  %v141_v48 = vrot.slane %v1358_v40, %v1455_v37  ;;  %v1361_v63 = vld [vmem:[%s1557_s3 + $0x38] sm:$0xff]  }
  0x28   :  { %v1359_v44 = vld [vmem:[%s1554_s0 + $0x4c] ss:$16 sps:$4 sm:$0xff]  }
  0x29   :  { %1160 = vmatpush3.bf16.msra.mxu0 %v1299_v29  ;;  %v1344_v29 = vld [vmem:[#allocation3 + $0x188] sm:$0xff]   ;;  %v199_v50 = vrot.slane %v1359_v44, %v1455_v37  ;;  %v145_v54 = vcombine.high %v127_v47, %v141_v48  ;;  %v144_v56 = vcombine.low %v127_v47, %v141_v48  ;;  %v1138_v44 = vld [vmem:[%s1558_s4] ss:$0 sm:$0xff] }
  0x2a   :  { %1182 = vmatpush3.bf16.msra.mxu1 %v1300_v30  ;;  %1161 = vmatprep.subr.bf16.mxu0 %v1301_v31  ;;  %v1345_v30 = vld [vmem:[#allocation3 + $0x140] sm:$0xff]   ;;  %v1360_v45 = vld [vmem:[%s1554_s0 + $0x6c] ss:$16 sps:$4 sm:$0xff]  }
  0x2b   :  { %1183 = vmatprep.subr.bf16.mxu1 %v1302_v34  ;;  %v1346_v31 = vld [vmem:[#allocation3 + $0x1c0] sm:$0xff]   ;;  %v1349_v34 = vld [vmem:[%s1554_s0 + $0x8] ss:$16 sps:$4 sm:$0xff]   ;;  %v213_v51 = vrot.slane %v1360_v45, %v1455_v37 }
  0x2c   :  { %v120_v41 = vrot.slane %v1349_v34, %v1455_v37  ;;  %v1367_v5 = vld [vmem:[%s1557_s3 + $0x8] sm:$0xff]   ;;  %v1137_v34 = vld [vmem:[%s1556_s2] ss:$0 sm:$0xff] }
  0x2d   :  { %1162 = vmatpush3.bf16.msra.mxu0 %v1303_v35  ;;  %v1351_v35 = vld [vmem:[%s1554_s0 + $0x28] ss:$16 sps:$4 sm:$0xff]   ;;  %v217_v57 = vcombine.high %v199_v50, %v213_v51 }
  0x2e   :  { %1184 = vmatpush3.bf16.msra.mxu1 %v1304_v36  ;;  %1191 = vmatprep.subr.bf16.mxu0 %v1317_v53  ;;  %v1353_v36 = vld [vmem:[%s1554_s0 + $0x48] ss:$16 sps:$4 sm:$0xff]   ;;  %v134_v42 = vrot.slane %v1351_v35, %v1455_v37 }
  0x2f   :  { %1213 = vmatprep.subr.bf16.mxu1 %v1318_v58  ;;  %v192_v43 = vrot.slane %v1353_v36, %v1455_v37  ;;  %v216_v58 = vcombine.low %v199_v50, %v213_v51  ;;  %v241_v61 = vpack.c.bf16 %v217_v57, %v145_v54  ;;  %v1417_v37 = vmov 0.0  }
  0x30   :  { %789 = vmatmul.mubr.bf16.vlgmr.msra.gmra.mxu0 %v234_v3  ;;  %v143_v49 = vcombine.high %v120_v41, %v134_v42  ;;  %v142_v52 = vcombine.low %v120_v41, %v134_v42  ;;  %v1365_v3 = vld [vmem:[%s1557_s3 + $0x18] sm:$0xff]  }
  0x31   :  { %1192 = vmatpush3.bf16.msra.mxu0 %v1319_v62  ;;  %830 = vmatmul.mubr.bf16.vlgmr.msra.gmra.mxu1 %v236_v6  ;;  %v215_v53 = vcombine.high %v192_v43, %v206_v46  ;;  %v214_v55 = vcombine.low %v192_v43, %v206_v46  ;;  %v240_v62 = vpack.c.bf16 %v216_v58, %v144_v56  ;;  %v1368_v6 = vld [vmem:[%s1557_s3] sm:$0xff]  }
  0x32   :  { %1193 = vmatprep.subr.bf16.mxu0 %v1321_v4  ;;  %1214 = vmatpush3.bf16.msra.mxu1 %v1320_v2  ;;  %v1364_v2 = vld [vmem:[%s1557_s3 + $0x20] sm:$0xff]   ;;  %v1366_v4 = vld [vmem:[%s1557_s3 + $0x10] sm:$0xff]  }
  0x33   :  { %1215 = vmatprep.subr.bf16.mxu1 %v1322_v7  ;;  %v239_v59 = vpack.c.bf16 %v215_v53, %v143_v49  ;;  %v238_v60 = vpack.c.bf16 %v214_v55, %v142_v52  ;;  %911 = vmatprep.mubr.bf16.mxu1 %v241_v61 }
  0x35   :  { %1194 = vmatpush3.bf16.msra.mxu0 %v1323_v8  ;;  %870 = vmatprep.mubr.bf16.mxu0 %v239_v59 }
  0x36   :  { %1195 = vmatprep.subr.bf16.mxu0 %v1325_v10  ;;  %1216 = vmatpush3.bf16.msra.mxu1 %v1324_v9 }
  0x37   :  { %1217 = vmatprep.subr.bf16.mxu1 %v1326_v11 }
  0x39   :  { %1196 = vmatpush3.bf16.msra.mxu0 %v1327_v12 }
  0x3a   :  { %1197 = vmatprep.subr.bf16.mxu0 %v1329_v14  ;;  %1218 = vmatpush3.bf16.msra.mxu1 %v1328_v13 }
  0x3b   :  { %1219 = vmatprep.subr.bf16.mxu1 %v1330_v15 }
  0x3d   :  { %1198 = vmatpush3.bf16.msra.mxu0 %v1331_v16 }
  0x3e   :  { %1199 = vmatprep.subr.bf16.mxu0 %v1333_v18  ;;  %1220 = vmatpush3.bf16.msra.mxu1 %v1332_v17 }
  0x3f   :  { %1221 = vmatprep.subr.bf16.mxu1 %v1334_v19 }
  0x41   :  { %1200 = vmatpush3.bf16.msra.mxu0 %v1335_v20 }
  0x42   :  { %1201 = vmatprep.subr.bf16.mxu0 %v1337_v22  ;;  %1222 = vmatpush3.bf16.msra.mxu1 %v1336_v21 }
  0x43   :  { %1223 = vmatprep.subr.bf16.mxu1 %v1338_v23 }
  0x45   :  { %1202 = vmatpush3.bf16.msra.mxu0 %v1339_v24 }
  0x46   :  { %1203 = vmatprep.subr.bf16.mxu0 %v1341_v26  ;;  %1224 = vmatpush3.bf16.msra.mxu1 %v1340_v25 }
  0x47   :  { %1225 = vmatprep.subr.bf16.mxu1 %v1342_v27 }
  0x49   :  { %1204 = vmatpush3.bf16.msra.mxu0 %v1343_v28 }
  0x4a   :  { %1205 = vmatprep.subr.bf16.mxu0 %v1345_v30  ;;  %1226 = vmatpush3.bf16.msra.mxu1 %v1344_v29 }
  0x4b   :  { %1227 = vmatprep.subr.bf16.mxu1 %v1346_v31 }
  0x4d   :  { %1206 = vmatpush3.bf16.msra.mxu0 %v1347_v32 }
  0x4e   :  { %1228 = vmatpush3.bf16.msra.mxu1 %v1348_v33  ;;  %1244 = vmatprep.subr.bf16.mxu0 %v1417_v37 }
  0x50   :  { %871 = vmatmul.mubr.bf16.vlgmr.msra.gmra.mxu0 %v238_v60 }
  0x51   :  { %912 = vmatmul.mubr.bf16.vlgmr.msra.gmra.mxu1 %v240_v62  ;;  %1245 = vmatpush3.bf16.msra.mxu0 %v1361_v63 }
  0x52   :  { %1246 = vmatprep.subr.bf16.mxu0 %v1417_v37  ;;  %1260 = vmatprep.mubr.msk.bf16.mxu0 %vm1418_vm0, %v1417_v37 }
  0x55   :  { %1247 = vmatpush3.bf16.msra.mxu0 %v1362_v0 }
  0x56   :  { %1248 = vmatprep.subr.bf16.mxu0 %v1417_v37 }
  0x59   :  { %1249 = vmatpush3.bf16.msra.mxu0 %v1363_v1 }
  0x5a   :  { %1250 = vmatprep.subr.bf16.mxu0 %v1417_v37 }
  0x5d   :  { %1251 = vmatpush3.bf16.msra.mxu0 %v1364_v2 }
  0x5e   :  { %1252 = vmatprep.subr.bf16.mxu0 %v1417_v37 }
  0x61   :  { %1253 = vmatpush3.bf16.msra.mxu0 %v1365_v3 }
  0x62   :  { %1254 = vmatprep.subr.bf16.mxu0 %v1417_v37 }
  0x65   :  { %1255 = vmatpush3.bf16.msra.mxu0 %v1366_v4 }
  0x66   :  { %1256 = vmatprep.subr.bf16.mxu0 %v1417_v37 }
  0x69   :  { %1257 = vmatpush3.bf16.msra.mxu0 %v1367_v5 }
  0x6a   :  { %1258 = vmatprep.subr.bf16.mxu0 %v1417_v37 }
  0x6d   :  { %1259 = vmatpush3.bf16.msra.mxu0 %v1368_v6 }
  0xf0   :  { %v1163_v7 = vpop.f32.mrf.mxu0 }
  0xf1   :  { %v1185_v8 = vpop.f32.mrf.mxu1 }
  0xf2   :  { %v1164_v9 = vpop.f32.mrf.mxu0 }
  0xf3   :  { %v1186_v10 = vpop.f32.mrf.mxu1  ;;  %v1165_v14 = vadd.f32 %v1164_v9, %v1163_v7 }
  0xf4   :  { %v1166_v11 = vpop.f32.mrf.mxu0  ;;  %v1187_v15 = vadd.f32 %v1186_v10, %v1185_v8 }
  0xf5   :  { %v1188_v12 = vpop.f32.mrf.mxu1 }
  0xf6   :  { %v1167_v13 = vpop.f32.mrf.mxu0  ;;  %v832_v20 = vadd.f32 %v1187_v15, %v1165_v14 }
  0xf7   :  { %v1189_v16 = vpop.f32.mrf.mxu1  ;;  %v1168_v21 = vadd.f32 %v1167_v13, %v1166_v11 }
  0xf8   :  { %v1190_v22 = vadd.f32 %v1189_v16, %v1188_v12 }
  0xfa   :  { %v835_v30 = vadd.f32 %v1190_v22, %v1168_v21 }
 0x110   :  { %v1207_v17 = vpop.f32.mrf.mxu0 }
 0x111   :  { %v1229_v18 = vpop.f32.mrf.mxu1 }
 0x112   :  { %v1208_v19 = vpop.f32.mrf.mxu0 }
 0x113   :  { %v1209_v23 = vadd.f32 %v1208_v19, %v1207_v17  ;;  %v1230_v24 = vpop.f32.mrf.mxu1 }
 0x114   :  { %v1210_v25 = vpop.f32.mrf.mxu0  ;;  %v1231_v27 = vadd.f32 %v1230_v24, %v1229_v18 }
 0x115   :  { %v873_v26 = vadd.f32 %v1209_v23, %v832_v20  ;;  %v1232_v28 = vpop.f32.mrf.mxu1 }
 0x116   :  { %v1211_v29 = vpop.f32.mrf.mxu0 }
 0x117   :  { %v914_v31 = vadd.f32 %v1231_v27, %v873_v26  ;;  %v1212_v32 = vadd.f32 %v1211_v29, %v1210_v25  ;;  %v1233_v33 = vpop.f32.mrf.mxu1 }
 0x118   :  { %v1234_v36 = vadd.f32 %v1233_v33, %v1232_v28 }
 0x119   :  { %v876_v35 = vadd.f32 %v1212_v32, %v835_v30  ;;  %v936_v38 = vadd.f32 %v1137_v34, %v914_v31 }
 0x11b   :  { %v917_v39 = vadd.f32 %v1234_v36, %v876_v35  ;;  %v938_v41 = vmax.f32 %v936_v38, 0.0 }
 0x11d   :  { %v937_v40 = vadd.f32 %v1137_v34, %v917_v39 }
 0x11f   :  { %v939_v42 = vmax.f32 %v937_v40, 0.0 }
 0x121   :  { %v940_v43 = vpack.c.bf16 %v939_v42, %v938_v41 }
 0x123   :  { %1261 = vmatmul.mubr.bf16.vlgmr.msra.gmra.mxu0 %v940_v43 }
 0x1e3   :  { %v1046_v45 = vpop.f32.mrf.mxu0 }
 0x1e4   :  { %v1047_v46 = vadd.f32 %v1138_v44, %v1046_v45 }
 0x1e5   :  { %v1262_v47 = vpop.f32.mrf.mxu0 }
 0x1e6   :  { %1054 = vst.msk [vmem:[#allocation6] sm:$0xff] %vm1053_vm1, %v1047_v46 }
 0x1e7   :  { %v1049_v48 = vpop.f32.mrf.mxu0 }
 0x1e8   :  { %v1050_v49 = vadd.f32 %v1138_v44, %v1049_v48 }
 0x1e9   :  { %v1263_v50 = vpop.f32.mrf.mxu0 }
 0x1ea   :  { %1055 = vst.msk [vmem:[#allocation6 + $0x8] sm:$0xff] %vm1053_vm1, %v1050_v49 }
 0x1eb   :  { %1060 = vsyncadd [#allocation5], 224  ;;  %s1419_s2 = smov [#allocation6]  }
 0x1ec   :  { %s1061_s23 = sshll.u32 %s1419_s2, 4  ;;  %s1062_s23 = int_to_ptr.vmem [resolvable:$true] %s1061_s23 }
 0x1ed   :  { %s1389_s24 = scalar_lea.vmem %s1062_s23, 32  ;;  %s1393_s1 = scalar_lea.vmem %s1062_s23, 256 }
 0x1ee   :  { %p1390_p5 = scmp.ne.s32.totalorder %s1062_s23, %s1389_s24  ;;  %p1394_p6 = scmp.lt.s32.totalorder %s1062_s23, %s1062_s23 }
 0x1ef   :  { %p1395_p7 = scmp.lt.s32.totalorder %s1393_s1, %s1389_s24 }
 0x1f1   :  { %p1396_p8 = por %p1395_p7, %p1394_p6 }
 0x1f3   :  { %p1397_p9 = pnand %p1396_p8, %p1390_p5 }
 0x1f5   :  { %1400 = shalt.err (!%p1397_p9)
}
 0x1f6   :  { %s1420_s4 = smov 32   ;;  %s1421_s25 = smov 2  }
 0x1f7   :  { %1067 = dma.vmem_to_hbm [thread:$0]  %s1062_s23, 32, %s1559_s5, [#allocation5], %s1420_s4, %s1420_s4, %s1421_s25  }
 0x1f8   :  { %1411 = dma.done.wait [#allocation5], 256  }
 0x1f9   :  { %1412 = vsyncadd [#allocation5], 4294967040 }
 0x1fa   :  { %1071 = vsyncpa [#allocation4], 1 }
 0x1fb   :  { %1072 = vsyncpa [#allocation5], 1 }

</bundles_post_ra>
